<compile_context>
chip_gen: v7x
topology: tpu7x:2x2x1
jax: 0.10.0
libtpu: 0.0.40
codegen_flags: <defaults>
</compile_context>

<pallas_src>
import jax
import jax.numpy as jnp
from jax.experimental import pallas as pl
from jax.experimental.pallas import tpu as pltpu


def _dms_kernel(x_ref, adj_ref, w1_ref, b1_ref, wfc_ref, bfc_ref, out_ref):
    # x_ref:   (bs*N, F_in)       f32   batch folded into matmul M dim
    # adj_ref: (bs*N, bs*N)       bf16  block-diagonal row-normalized adjacency
    # w1_ref:  (F_in, Hp)         bf16  inner-model projection (H zero-padded)
    # b1_ref:  (1, Hp)            f32
    # wfc_ref: (Hp, OF_pad)       bf16  fc weight, 128-lane padded
    # bfc_ref: (1, OF_pad)        f32
    # out_ref: (bs*N, OF_pad)     bf16  lane-dense unmasked store

    # In-kernel bf16 pack of x (VPU work hidden under MXU slack).
    x = x_ref[...].astype(jnp.bfloat16)

    # Inner-model projection over ALL (batch, node) rows at once: (bs*N, Hp) f32.
    h = jnp.dot(x, w1_ref[...], preferred_element_type=jnp.float32)

    # Neighbor aggregation as a single 2-D matmul against kron(I_bs, A_norm):
    # one MXU push instead of bs tiny (N,N)@(N,H) dots.
    agg = jnp.dot(adj_ref[...], h.astype(jnp.bfloat16),
                  preferred_element_type=jnp.float32)

    # b1 added AFTER aggregation: exact because every adjacency row sums to 1
    # (A_norm @ (h + b1) == A_norm @ h + b1).  Revisit if the normalization
    # ever changes (e.g. symmetric D^-1/2 A D^-1/2).
    h2 = jnp.maximum(agg + b1_ref[...], 0.0)

    # DirectMultiStepModel.fc — f32 accumulate + bias, bf16 lane-dense store.
    o = jnp.dot(h2.astype(jnp.bfloat16), wfc_ref[...],
                preferred_element_type=jnp.float32)
    out_ref[...] = (o + bfc_ref[...]).astype(out_ref.dtype)


def build_block_adjacency(edge_index, num_nodes, batch_size):
    """Once-per-graph: dense row-normalized adjacency (with self loops),
    replicated block-diagonally over the batch. Shape (bs*N, bs*N), bf16."""
    src, dst = edge_index[0], edge_index[1]
    adj = jnp.zeros((num_nodes, num_nodes), jnp.float32).at[dst, src].set(1.0)
    # Self-loop weight exactly 1 even if already present in edge_index.
    idx = jnp.arange(num_nodes)
    adj = adj.at[idx, idx].set(1.0)
    adj = adj / jnp.sum(adj, axis=1, keepdims=True)
    blk = jnp.kron(jnp.eye(batch_size, dtype=jnp.float32), adj)
    return blk.astype(jnp.bfloat16)


def prepare_params(params):
    """Once-per-model: pad hidden dim and fc output dim to 128-lane multiples
    (numerically exact zero padding) and cast matmul operands to bf16."""
    f_in, H = params["w1"].shape
    out_feat = params["wfc"].shape[1]
    hp = max(128, ((H + 127) // 128) * 128)
    of_pad = max(128, ((out_feat + 127) // 128) * 128)
    return {
        "w1": jnp.pad(params["w1"], ((0, 0), (0, hp - H))).astype(jnp.bfloat16),
        "b1": jnp.pad(params["b1"], ((0, 0), (0, hp - H))).astype(jnp.float32),
        "wfc": jnp.pad(params["wfc"],
                       ((0, hp - H), (0, of_pad - out_feat))).astype(jnp.bfloat16),
        "bfc": jnp.pad(params["bfc"],
                       ((0, 0), (0, of_pad - out_feat))).astype(jnp.float32),
        "out_feat": out_feat,
    }


def direct_multi_step_forward(x, adj_block, prepared, output_dim, prediction_horizon):
    """x: (bs, N, T, d) float32; adj_block / prepared are prebuilt constants."""
    bs, N, T, d = x.shape
    f_in = T * d
    hp = prepared["w1"].shape[1]
    of_pad = prepared["wfc"].shape[1]
    out_feat = output_dim * prediction_horizon
    M = bs * N

    x2 = x.reshape(M, f_in)  # f32; bf16 pack happens inside the kernel

    flops = 2 * M * (f_in * hp + M * hp + hp * of_pad)
    bytes_accessed = (x2.size * 4 + adj_block.size * 2
                      + prepared["w1"].size * 2 + prepared["b1"].size * 4
                      + prepared["wfc"].size * 2 + prepared["bfc"].size * 4
                      + M * of_pad * 2)

    out = pl.pallas_call(
        _dms_kernel,
        out_shape=jax.ShapeDtypeStruct((M, of_pad), jnp.bfloat16),
        grid_spec=pl.GridSpec(
            grid=(1,),  # single step: constants presented once, whole problem resident
            in_specs=[
                pl.BlockSpec((M, f_in), lambda i: (0, 0)),
                pl.BlockSpec((M, M), lambda i: (0, 0)),
                pl.BlockSpec((f_in, hp), lambda i: (0, 0)),
                pl.BlockSpec((1, hp), lambda i: (0, 0)),
                pl.BlockSpec((hp, of_pad), lambda i: (0, 0)),
                pl.BlockSpec((1, of_pad), lambda i: (0, 0)),
            ],
            out_specs=pl.BlockSpec((M, of_pad), lambda i: (0, 0)),
        ),
        compiler_params=pltpu.CompilerParams(
            dimension_semantics=("arbitrary",)),
        cost_estimate=pl.CostEstimate(flops=flops, transcendentals=0,
                                      bytes_accessed=bytes_accessed),
    )(x2, adj_block, prepared["w1"], prepared["b1"],
      prepared["wfc"], prepared["bfc"])

    out = out[:, :out_feat]                       # drop lane padding (bf16 pass)
    return out.reshape(bs, N, prediction_horizon, -1)


def init_params(key, f_in, hidden, output_dim, prediction_horizon):
    k1, k2, k3, k4 = jax.random.split(key, 4)
    out_feat = output_dim * prediction_horizon
    # nn.Linear stores weight as (out, in); transpose for kernel-side (in, out).
    w1_t = jax.random.normal(k1, (hidden, f_in), jnp.float32) * 0.1
    wfc_t = jax.random.normal(k3, (out_feat, hidden), jnp.float32) * 0.1
    return {
        "w1": w1_t.T,
        "b1": (jax.random.normal(k2, (hidden,), jnp.float32) * 0.1)[None, :],
        "wfc": wfc_t.T,
        "bfc": (jax.random.normal(k4, (out_feat,), jnp.float32) * 0.1)[None, :],
    }


if __name__ == "__main__":
    bs, N, T, d = 2, 8, 4, 4
    hidden = 32
    output_dim = 4
    prediction_horizon = 3

    key = jax.random.PRNGKey(0)
    kx, kp = jax.random.split(key)
    x = jax.random.normal(kx, (bs, N, T, d), jnp.float32)

    # Deterministic ring graph edge_index: (2, E)
    src = jnp.arange(N, dtype=jnp.int32)
    dst = (src + 1) % N
    edge_index = jnp.stack([jnp.concatenate([src, dst]),
                            jnp.concatenate([dst, src])], axis=0)

    # Built ONCE (not per forward call): graph operator and padded/cast params.
    adj_block = jax.block_until_ready(build_block_adjacency(edge_index, N, bs))
    raw_params = init_params(kp, T * d, hidden, output_dim, prediction_horizon)
    prepared = jax.tree_util.tree_map(jax.block_until_ready,
                                      prepare_params(raw_params))

    fwd = jax.jit(direct_multi_step_forward, static_argnums=(3, 4))
    out = fwd(x, adj_block, prepared, output_dim, prediction_horizon)
    out = jax.block_until_ready(out)

    assert out.shape == (bs, N, prediction_horizon, output_dim), out.shape
    assert bool(jnp.all(jnp.isfinite(out.astype(jnp.float32))))
    print("KERNEL_OK")
</pallas_src>

<mosaic_0001>
module attributes {stable_mosaic.version = 11 : i64} {
  func.func @_dms_kernel(%arg0: i32, %arg1: memref<16x16xf32, #tpu.memory_space<vmem>>, %arg2: memref<16x16xbf16, #tpu.memory_space<vmem>>, %arg3: memref<16x128xbf16, #tpu.memory_space<vmem>>, %arg4: memref<1x128xf32, #tpu.memory_space<vmem>>, %arg5: memref<128x128xbf16, #tpu.memory_space<vmem>>, %arg6: memref<1x128xf32, #tpu.memory_space<vmem>>, %arg7: memref<16x128xbf16, #tpu.memory_space<vmem>>) attributes {dimension_semantics = [#tpu.dimension_semantics<arbitrary>], iteration_bounds = array<i64: 1>, scalar_prefetch = 0 : i64, scratch_operands = 0 : i64, tpu.core_type = #tpu.core_type<tc>, window_params = [{pipeline_mode = #tpu.pipeline_mode<synchronous>, transform_indices = @transform_0, window_bounds = array<i64: 16, 16>}, {pipeline_mode = #tpu.pipeline_mode<synchronous>, transform_indices = @transform_1, window_bounds = array<i64: 16, 16>}, {pipeline_mode = #tpu.pipeline_mode<synchronous>, transform_indices = @transform_2, window_bounds = array<i64: 16, 128>}, {pipeline_mode = #tpu.pipeline_mode<synchronous>, transform_indices = @transform_3, window_bounds = array<i64: 1, 128>}, {pipeline_mode = #tpu.pipeline_mode<synchronous>, transform_indices = @transform_4, window_bounds = array<i64: 128, 128>}, {pipeline_mode = #tpu.pipeline_mode<synchronous>, transform_indices = @transform_5, window_bounds = array<i64: 1, 128>}, {pipeline_mode = #tpu.pipeline_mode<synchronous>, transform_indices = @transform_6, window_bounds = array<i64: 16, 128>}]} {
    %c0 = arith.constant 0 : index
    %c0_0 = arith.constant 0 : index
    %0 = vector.load %arg1[%c0, %c0_0] : memref<16x16xf32, #tpu.memory_space<vmem>>, vector<16x16xf32>
    %1 = arith.truncf %0 : vector<16x16xf32> to vector<16x16xbf16>
    %c0_1 = arith.constant 0 : index
    %c0_2 = arith.constant 0 : index
    %2 = vector.load %arg3[%c0_1, %c0_2] : memref<16x128xbf16, #tpu.memory_space<vmem>>, vector<16x128xbf16>
    %cst = arith.constant dense<0.000000e+00> : vector<16x128xf32>
    %3 = tpu.matmul %1, %2, %cst {dimension_numbers = #tpu.dot_dimension_numbers<[1], [0], [0], [1], [0, 0, 1, 1], [], []>} : vector<16x16xbf16>, vector<16x128xbf16>, vector<16x128xf32> -> vector<16x128xf32>
    %c0_3 = arith.constant 0 : index
    %c0_4 = arith.constant 0 : index
    %4 = vector.load %arg2[%c0_3, %c0_4] : memref<16x16xbf16, #tpu.memory_space<vmem>>, vector<16x16xbf16>
    %5 = arith.truncf %3 : vector<16x128xf32> to vector<16x128xbf16>
    %cst_5 = arith.constant dense<0.000000e+00> : vector<16x128xf32>
    %6 = tpu.matmul %4, %5, %cst_5 {dimension_numbers = #tpu.dot_dimension_numbers<[1], [0], [0], [1], [0, 0, 1, 1], [], []>} : vector<16x16xbf16>, vector<16x128xbf16>, vector<16x128xf32> -> vector<16x128xf32>
    %c0_6 = arith.constant 0 : index
    %c0_7 = arith.constant 0 : index
    %7 = vector.load %arg4[%c0_6, %c0_7] : memref<1x128xf32, #tpu.memory_space<vmem>>, vector<1x128xf32>
    %8 = vector.broadcast %7 : vector<1x128xf32> to vector<16x128xf32>
    %9 = arith.addf %6, %8 : vector<16x128xf32>
    %cst_8 = arith.constant 0.000000e+00 : f32
    %10 = vector.broadcast %cst_8 : f32 to vector<16x128xf32>
    %11 = arith.maximumf %9, %10 : vector<16x128xf32>
    %12 = arith.truncf %11 : vector<16x128xf32> to vector<16x128xbf16>
    %c0_9 = arith.constant 0 : index
    %c0_10 = arith.constant 0 : index
    %13 = vector.load %arg5[%c0_9, %c0_10] : memref<128x128xbf16, #tpu.memory_space<vmem>>, vector<128x128xbf16>
    %cst_11 = arith.constant dense<0.000000e+00> : vector<16x128xf32>
    %14 = tpu.matmul %12, %13, %cst_11 {dimension_numbers = #tpu.dot_dimension_numbers<[1], [0], [0], [1], [0, 0, 1, 1], [], []>} : vector<16x128xbf16>, vector<128x128xbf16>, vector<16x128xf32> -> vector<16x128xf32>
    %c0_12 = arith.constant 0 : index
    %c0_13 = arith.constant 0 : index
    %15 = vector.load %arg6[%c0_12, %c0_13] : memref<1x128xf32, #tpu.memory_space<vmem>>, vector<1x128xf32>
    %16 = vector.broadcast %15 : vector<1x128xf32> to vector<16x128xf32>
    %17 = arith.addf %14, %16 : vector<16x128xf32>
    %18 = arith.truncf %17 : vector<16x128xf32> to vector<16x128xbf16>
    %c0_14 = arith.constant 0 : index
    %c0_15 = arith.constant 0 : index
    %19 = vector.load %arg7[%c0_14, %c0_15] : memref<16x128xbf16, #tpu.memory_space<vmem>>, vector<16x128xbf16>
    tpu.vector_store %arg7[%c0_14, %c0_15], %18 {strides = array<i32>} : memref<16x128xbf16, #tpu.memory_space<vmem>>, vector<16x128xbf16>,
    return
  }
  func.func @transform_0(%arg0: i32) -> (i32, i32) {
    %c0_i32 = arith.constant 0 : i32
    %c0_i32_0 = arith.constant 0 : i32
    %c0_i32_1 = arith.constant 0 : i32
    return %c0_i32, %c0_i32_0 : i32, i32
  }
  func.func @transform_1(%arg0: i32) -> (i32, i32) {
    %c0_i32 = arith.constant 0 : i32
    %c0_i32_0 = arith.constant 0 : i32
    %c0_i32_1 = arith.constant 0 : i32
    return %c0_i32, %c0_i32_0 : i32, i32
  }
  func.func @transform_2(%arg0: i32) -> (i32, i32) {
    %c0_i32 = arith.constant 0 : i32
    %c0_i32_0 = arith.constant 0 : i32
    %c0_i32_1 = arith.constant 0 : i32
    return %c0_i32, %c0_i32_0 : i32, i32
  }
  func.func @transform_3(%arg0: i32) -> (i32, i32) {
    %c0_i32 = arith.constant 0 : i32
    %c0_i32_0 = arith.constant 0 : i32
    %c0_i32_1 = arith.constant 0 : i32
    return %c0_i32, %c0_i32_0 : i32, i32
  }
  func.func @transform_4(%arg0: i32) -> (i32, i32) {
    %c0_i32 = arith.constant 0 : i32
    %c0_i32_0 = arith.constant 0 : i32
    %c0_i32_1 = arith.constant 0 : i32
    return %c0_i32, %c0_i32_0 : i32, i32
  }
  func.func @transform_5(%arg0: i32) -> (i32, i32) {
    %c0_i32 = arith.constant 0 : i32
    %c0_i32_0 = arith.constant 0 : i32
    %c0_i32_1 = arith.constant 0 : i32
    return %c0_i32, %c0_i32_0 : i32, i32
  }
  func.func @transform_6(%arg0: i32) -> (i32, i32) {
    %c0_i32 = arith.constant 0 : i32
    %c0_i32_0 = arith.constant 0 : i32
    %c0_i32_1 = arith.constant 0 : i32
    return %c0_i32, %c0_i32_0 : i32, i32
  }
}

</mosaic_0001>

<bundles_post_ra>
// kernel: direct_multi_step_forward.1
= control target key start
LH: loop header
LB: loop body
LE: loop exit
PB: predicated region body
PF: predicated region fallthrough
CT: control target
= control target key end

     0   :  { %v348_v0 = vmov 0.0   ;;  %vm349_vm0 = vmmov 0   ;;  %vm35_vm1 = vcmask 130048   ;;  %s432_s2 = inlined_call_operand.vmem [shape: bf16[16,128], index: 2, kind: input, shape index: {}]   ;;  %s433_s0 = inlined_call_operand.vmem [shape: f32[16,16], index: 0, kind: input, shape index: {}]   ;;  %s434_s1 = inlined_call_operand.vmem [shape: bf16[16,16], index: 1, kind: input, shape index: {}]   ;;  %s435_s4 = inlined_call_operand.vmem [shape: bf16[128,128], index: 4, kind: input, shape index: {}]   ;;  %s436_s3 = inlined_call_operand.vmem [shape: f32[1,128], index: 3, kind: input, shape index: {}]   ;;  %s437_s5 = inlined_call_operand.vmem [shape: f32[1,128], index: 5, kind: input, shape index: {}]   ;;  %s438_s6 = inlined_call_operand.vmem [shape: bf16[16,128], index: 6, kind: output, shape index: {}]  }
   0x1   :  { %304 = vmatprep.subr.bf16.mxu1 %v348_v0  ;;  %v338_v1 = vld [vmem:[%s432_s2] sm:$0xff]   ;;  %306 = vmatprep.mubr.msk.bf16.mxu1 %vm349_vm0, %v348_v0  ;;  %v25_v3 = vld [vmem:[%s433_s0 + $0x8] sm:$0xff]  ;;  %v342_v7 = vld [vmem:[%s435_s4 + $0x10] sm:$0xff]  }
   0x2   :  { %v24_v2 = vld [vmem:[%s433_s0] sm:$0xff]  ;;  %316 = vmatprep.subr.bf16.mxu0 %v348_v0  ;;  %332 = vmatprep.mubr.msk.bf16.mxu0 %vm349_vm0, %v348_v0  ;;  %v341_v6 = vld [vmem:[%s435_s4 + $0x8] sm:$0xff]   ;;  %v343_v8 = vld [vmem:[%s435_s4 + $0x18] sm:$0xff]  }
   0x3   :  { %305 = vmatpush3.bf16.msra.mxu1 %v338_v1  ;;  %v26_v4 = vpack.c.bf16 %v25_v3, %v24_v2  ;;  %v340_v5 = vld [vmem:[%s435_s4] sm:$0xff]   ;;  %v345_v10 = vld [vmem:[%s435_s4 + $0x28] sm:$0xff]   ;;  %v346_v17 = vld [vmem:[%s435_s4 + $0x30] sm:$0xff]  }
   0x4   :  { %310 = vmatprep.subr.bf16.mxu1 %v348_v0  ;;  %317 = vmatpush3.bf16.msra.mxu0 %v340_v5  ;;  %v344_v9 = vld [vmem:[%s435_s4 + $0x20] sm:$0xff]   ;;  %v347_v18 = vld [vmem:[%s435_s4 + $0x38] sm:$0xff]  }
   0x5   :  { %318 = vmatprep.subr.bf16.mxu0 %v348_v0  ;;  %v339_v16 = vld [vmem:[%s434_s1] sm:$0xff]  }
   0x6   :  { %307 = vmatmul.mubr.msk.bf16.vlgmr.msra.gmra.mrb[0].mxu1 %vm35_vm1, %v26_v4  ;;  %v270_v19 = vld [vmem:[%s436_s3] ss:$0 sm:$0xff] }
   0x7   :  { %312 = vmatprep.mubr.msk.bf16.mxu1 %vm349_vm0, %v348_v0  ;;  %v273_v29 = vld [vmem:[%s437_s5] ss:$0 sm:$0xff] }
   0x8   :  { %319 = vmatpush3.bf16.msra.mxu0 %v341_v6 }
   0x9   :  { %320 = vmatprep.subr.bf16.mxu0 %v348_v0 }
   0xc   :  { %321 = vmatpush3.bf16.msra.mxu0 %v342_v7 }
   0xd   :  { %322 = vmatprep.subr.bf16.mxu0 %v348_v0 }
  0x10   :  { %323 = vmatpush3.bf16.msra.mxu0 %v343_v8 }
  0x11   :  { %324 = vmatprep.subr.bf16.mxu0 %v348_v0 }
  0x14   :  { %325 = vmatpush3.bf16.msra.mxu0 %v344_v9 }
  0x15   :  { %326 = vmatprep.subr.bf16.mxu0 %v348_v0 }
  0x18   :  { %327 = vmatpush3.bf16.msra.mxu0 %v345_v10 }
  0x19   :  { %328 = vmatprep.subr.bf16.mxu0 %v348_v0 }
  0x1c   :  { %329 = vmatpush3.bf16.msra.mxu0 %v346_v17 }
  0x1d   :  { %330 = vmatprep.subr.bf16.mxu0 %v348_v0 }
  0x20   :  { %331 = vmatpush3.bf16.msra.mxu0 %v347_v18 }
  0xd9   :  { %v73_v11 = vpop.f32.mrb[0].mxu1 }
  0xda   :  { %v308_v12 = vpop.f32.mrb[1].mxu1 }
  0xdb   :  { %v76_v13 = vpop.f32.mrb[2].mxu1 }
  0xdc   :  { %v82_v14 = vpack.c.bf16 %v76_v13, %v73_v11  ;;  %v309_v15 = vpop.f32.mrb[3].mxu1 }
  0xde   :  { %311 = vmatpush3.bf16.msra.mxu1 %v82_v14 }
  0xe1   :  { %313 = vmatmul.mubr.msk.bf16.vlgmr.msra.gmra.mrb[4].mxu1 %vm35_vm1, %v339_v16 }
 0x1b4   :  { %v132_v20 = vpop.f32.mrb[4].mxu1 }
 0x1b5   :  { %v133_v21 = vadd.f32 %v270_v19, %v132_v20  ;;  %v314_v22 = vpop.f32.mrb[5].mxu1 }
 0x1b6   :  { %v135_v23 = vpop.f32.mrb[6].mxu1 }
 0x1b7   :  { %v136_v24 = vadd.f32 %v270_v19, %v135_v23  ;;  %v315_v25 = vpop.f32.mrb[7].mxu1  ;;  %v139_v26 = vmax.f32 %v133_v21, 0.0 }
 0x1b9   :  { %v140_v27 = vmax.f32 %v136_v24, 0.0 }
 0x1bb   :  { %v141_v28 = vpack.c.bf16 %v140_v27, %v139_v26 }
 0x1bd   :  { %333 = vmatmul.mubr.bf16.vlgmr.msra.gmra.mrb[0].mxu0 %v141_v28 }
 0x290   :  { %v247_v30 = vpop.f32.mrb[0].mxu0 }
 0x291   :  { %v334_v31 = vpop.f32.mrb[1].mxu0  ;;  %v248_v33 = vadd.f32 %v273_v29, %v247_v30 }
 0x292   :  { %v250_v32 = vpop.f32.mrb[2].mxu0 }
 0x293   :  { %v251_v34 = vadd.f32 %v273_v29, %v250_v32  ;;  %v335_v35 = vpop.f32.mrb[3].mxu0 }
 0x295   :  { %v289_v36 = vpack.c.bf16 %v251_v34, %v248_v33 }
 0x297   :  { %290 = vst [vmem:[%s438_s6] sm:$0xff] %v289_v36  }

</bundles_post_ra>
